<compile_context>
chip_gen: v5e
topology: v5e:2x2
jax: 0.10.0
libtpu: 0.0.40
codegen_flags: <defaults>
</compile_context>

<pallas_src>
import functools

import jax
import jax.numpy as jnp
from jax.experimental import pallas as pl
from jax.experimental.pallas import tpu as pltpu

_BN_EPS = 1e-5


def _stox_mtj_kernel(x_ref, rand_ref, gamma_ref, beta_ref, o_ref, *, inv_m):
    # x_ref / rand_ref: (N, TC, L)   gamma_ref / beta_ref: (TC, 1)
    x = x_ref[...].astype(jnp.float32)

    # --- BatchNorm1d training-mode batch statistics, single pass per channel.
    # Reduce batch axis first (cheap vreg adds), then the lane axis (XLU).
    xs = jnp.sum(x, axis=0)                                   # (TC, L)
    xss = jnp.sum(x * x, axis=0)                              # (TC, L)
    mean = jnp.sum(xs, axis=-1, keepdims=True) * inv_m        # (TC, 1)
    ex2 = jnp.sum(xss, axis=-1, keepdims=True) * inv_m        # (TC, 1)
    var = jnp.maximum(ex2 - mean * mean, 0.0)                 # biased variance

    scale = jax.lax.rsqrt(var + _BN_EPS) * gamma_ref[...]     # (TC, 1)
    shift = beta_ref[...] - mean * scale                      # (TC, 1)
    normed = x * scale + shift                                # (N, TC, L)

    # --- stochastic MTJ switching ---
    t = jnp.tanh(4.0 * normed)
    out = jnp.where(t > rand_ref[...], 1.0, -1.0)
    out = jnp.where(normed == 0.0, 0.0, out)

    # clamp(normed,-1,1) - clamp(normed,-1,1).detach() is exactly 0 forward.
    # TODO(synk): the straight-through-estimator gradient of that term would
    # need a custom_vjp; this kernel defines the forward pass only.
    o_ref[...] = out.astype(o_ref.dtype)


def _pick_channel_tile(N, C, L, target_bytes=4 << 20):
    """Channel tile so x/rand/out f32 blocks (double-buffered) stay a few MiB."""
    if C <= 8:
        return C
    per_ch_bytes = 4 * N * L
    tc = max(1, target_bytes // max(per_ch_bytes, 1))
    tc = max(8, (tc // 8) * 8)
    return int(min(tc, C))


def stox_mtj(x, gamma, beta, seed=0, *, channel_tile=None):
    """x: (N, C, L) float32 (NCL, matching nn.BatchNorm1d). Returns (N, C, L)."""
    x = jnp.asarray(x, jnp.float32)
    N, C, L = x.shape
    tc = channel_tile if channel_tile is not None else _pick_channel_tile(N, C, L)

    # torch.rand_like equivalent: uniform noise in [-1, 1), generated with the
    # standard JAX PRNG and streamed into the kernel (the TPU hardware PRNG
    # primitives are not available under the CPU interpret checker).
    rand = jax.random.uniform(
        jax.random.PRNGKey(seed), (N, C, L), dtype=jnp.float32,
        minval=-1.0, maxval=1.0)

    gamma2 = jnp.asarray(gamma, jnp.float32).reshape(C, 1)
    beta2 = jnp.asarray(beta, jnp.float32).reshape(C, 1)

    kernel = functools.partial(_stox_mtj_kernel, inv_m=1.0 / float(N * L))

    # NOTE: if N*L is ever too large for a single (N, tc, L) block in VMEM
    # (64 MiB on v7x), add a second "arbitrary" grid axis over L and stream
    # sum / sum-of-squares into a small VMEM accumulator.
    return pl.pallas_call(
        kernel,
        out_shape=jax.ShapeDtypeStruct((N, C, L), jnp.float32),
        grid=(pl.cdiv(C, tc),),
        in_specs=[
            pl.BlockSpec((N, tc, L), lambda c: (0, c, 0)),   # x
            pl.BlockSpec((N, tc, L), lambda c: (0, c, 0)),   # rand
            pl.BlockSpec((tc, 1), lambda c: (c, 0)),         # gamma
            pl.BlockSpec((tc, 1), lambda c: (c, 0)),         # beta
        ],
        out_specs=pl.BlockSpec((N, tc, L), lambda c: (0, c, 0)),
        compiler_params=pltpu.CompilerParams(
            dimension_semantics=("parallel",),               # shard channels across TCs (v7x)
        ),
    )(x, rand, gamma2, beta2)


if __name__ == "__main__":
    # Small shapes: batch=2, channels=4, length=16 (NCL for BatchNorm1d).
    key = jax.random.PRNGKey(0)
    x = jax.random.normal(key, (2, 4, 16), dtype=jnp.float32)

    # Deterministic parameters matching nn.BatchNorm1d.__init__ defaults.
    gamma = jnp.ones((4,), dtype=jnp.float32)   # bn.weight
    beta = jnp.zeros((4,), dtype=jnp.float32)   # bn.bias

    out = stox_mtj(x, gamma, beta, seed=0)
    jax.block_until_ready(out)

    assert out.shape == (2, 4, 16)
    assert out.dtype == jnp.float32
    # Output values must be in {-1, 0, +1}
    assert bool(jnp.all(jnp.isin(out, jnp.array([-1.0, 0.0, 1.0], jnp.float32)))), "bad values"

    print("KERNEL_OK")
</pallas_src>

<mosaic_0001>
module attributes {stable_mosaic.version = 11 : i64} {
  func.func @_stox_mtj_kernel(%arg0: i32, %arg1: memref<2x4x16xf32, #tpu.memory_space<vmem>>, %arg2: memref<2x4x16xf32, #tpu.memory_space<vmem>>, %arg3: memref<4x1xf32, #tpu.memory_space<vmem>>, %arg4: memref<4x1xf32, #tpu.memory_space<vmem>>, %arg5: memref<2x4x16xf32, #tpu.memory_space<vmem>>) attributes {dimension_semantics = [#tpu.dimension_semantics<parallel>], iteration_bounds = array<i64: 1>, scalar_prefetch = 0 : i64, scratch_operands = 0 : i64, tpu.core_type = #tpu.core_type<tc>, window_params = [{transform_indices = @transform_0, window_bounds = array<i64: 2, 4, 16>}, {transform_indices = @transform_1, window_bounds = array<i64: 2, 4, 16>}, {transform_indices = @transform_2, window_bounds = array<i64: 4, 1>}, {transform_indices = @transform_3, window_bounds = array<i64: 4, 1>}, {transform_indices = @transform_4, window_bounds = array<i64: 2, 4, 16>}]} {
    %c0 = arith.constant 0 : index
    %c0_0 = arith.constant 0 : index
    %c0_1 = arith.constant 0 : index
    %0 = vector.load %arg1[%c0, %c0_0, %c0_1] : memref<2x4x16xf32, #tpu.memory_space<vmem>>, vector<2x4x16xf32>
    %cst = arith.constant dense<0.000000e+00> : vector<4x16xf32>
    %1 = vector.multi_reduction <add>, %0, %cst [0] : vector<2x4x16xf32> to vector<4x16xf32>
    %2 = arith.mulf %0, %0 : vector<2x4x16xf32>
    %cst_2 = arith.constant dense<0.000000e+00> : vector<4x16xf32>
    %3 = vector.multi_reduction <add>, %2, %cst_2 [0] : vector<2x4x16xf32> to vector<4x16xf32>
    %cst_3 = arith.constant dense<0.000000e+00> : vector<4xf32>
    %4 = vector.multi_reduction <add>, %1, %cst_3 [1] : vector<4x16xf32> to vector<4xf32>
    %5 = vector.shape_cast %4 : vector<4xf32> to vector<4x1xf32>
    %cst_4 = arith.constant 3.125000e-02 : f32
    %6 = vector.broadcast %cst_4 : f32 to vector<4x1xf32>
    %7 = arith.mulf %5, %6 : vector<4x1xf32>
    %cst_5 = arith.constant dense<0.000000e+00> : vector<4xf32>
    %8 = vector.multi_reduction <add>, %3, %cst_5 [1] : vector<4x16xf32> to vector<4xf32>
    %9 = vector.shape_cast %8 : vector<4xf32> to vector<4x1xf32>
    %cst_6 = arith.constant 3.125000e-02 : f32
    %10 = vector.broadcast %cst_6 : f32 to vector<4x1xf32>
    %11 = arith.mulf %9, %10 : vector<4x1xf32>
    %12 = arith.mulf %7, %7 : vector<4x1xf32>
    %13 = arith.subf %11, %12 : vector<4x1xf32>
    %cst_7 = arith.constant 0.000000e+00 : f32
    %14 = vector.broadcast %cst_7 : f32 to vector<4x1xf32>
    %15 = arith.maximumf %13, %14 : vector<4x1xf32>
    %cst_8 = arith.constant 9.99999974E-6 : f32
    %16 = vector.broadcast %cst_8 : f32 to vector<4x1xf32>
    %17 = arith.addf %15, %16 : vector<4x1xf32>
    %18 = math.rsqrt %17 : vector<4x1xf32>
    %c0_9 = arith.constant 0 : index
    %c0_10 = arith.constant 0 : index
    %19 = vector.load %arg3[%c0_9, %c0_10] : memref<4x1xf32, #tpu.memory_space<vmem>>, vector<4x1xf32>
    %20 = arith.mulf %18, %19 : vector<4x1xf32>
    %c0_11 = arith.constant 0 : index
    %c0_12 = arith.constant 0 : index
    %21 = vector.load %arg4[%c0_11, %c0_12] : memref<4x1xf32, #tpu.memory_space<vmem>>, vector<4x1xf32>
    %22 = arith.mulf %7, %20 : vector<4x1xf32>
    %23 = arith.subf %21, %22 : vector<4x1xf32>
    %24 = vector.shape_cast %20 : vector<4x1xf32> to vector<1x4x1xf32>
    %25 = vector.broadcast %24 : vector<1x4x1xf32> to vector<2x4x16xf32>
    %26 = arith.mulf %0, %25 : vector<2x4x16xf32>
    %27 = vector.shape_cast %23 : vector<4x1xf32> to vector<1x4x1xf32>
    %28 = vector.broadcast %27 : vector<1x4x1xf32> to vector<2x4x16xf32>
    %29 = arith.addf %26, %28 : vector<2x4x16xf32>
    %cst_13 = arith.constant 4.000000e+00 : f32
    %30 = vector.broadcast %cst_13 : f32 to vector<2x4x16xf32>
    %31 = arith.mulf %30, %29 : vector<2x4x16xf32>
    %32 = math.tanh %31 : vector<2x4x16xf32>
    %c0_14 = arith.constant 0 : index
    %c0_15 = arith.constant 0 : index
    %c0_16 = arith.constant 0 : index
    %33 = vector.load %arg2[%c0_14, %c0_15, %c0_16] : memref<2x4x16xf32, #tpu.memory_space<vmem>>, vector<2x4x16xf32>
    %34 = arith.cmpf ogt, %32, %33 : vector<2x4x16xf32>
    %cst_17 = arith.constant 1.000000e+00 : f32
    %cst_18 = arith.constant -1.000000e+00 : f32
    %35 = vector.broadcast %cst_17 : f32 to vector<2x4x16xf32>
    %36 = vector.broadcast %cst_18 : f32 to vector<2x4x16xf32>
    %37 = arith.select %34, %35, %36 : vector<2x4x16xi1>, vector<2x4x16xf32>
    %cst_19 = arith.constant 0.000000e+00 : f32
    %38 = vector.broadcast %cst_19 : f32 to vector<2x4x16xf32>
    %39 = arith.cmpf oeq, %29, %38 : vector<2x4x16xf32>
    %cst_20 = arith.constant 0.000000e+00 : f32
    %40 = vector.broadcast %cst_20 : f32 to vector<2x4x16xf32>
    %41 = arith.select %39, %40, %37 : vector<2x4x16xi1>, vector<2x4x16xf32>
    %c0_21 = arith.constant 0 : index
    %c0_22 = arith.constant 0 : index
    %c0_23 = arith.constant 0 : index
    %42 = vector.load %arg5[%c0_21, %c0_22, %c0_23] : memref<2x4x16xf32, #tpu.memory_space<vmem>>, vector<2x4x16xf32>
    tpu.vector_store %arg5[%c0_21, %c0_22, %c0_23], %41 {strides = array<i32>} : memref<2x4x16xf32, #tpu.memory_space<vmem>>, vector<2x4x16xf32>,
    return
  }
  func.func @transform_0(%arg0: i32) -> (i32, i32, i32) {
    %c0_i32 = arith.constant 0 : i32
    %c0_i32_0 = arith.constant 0 : i32
    %c0_i32_1 = arith.constant 0 : i32
    return %c0_i32, %arg0, %c0_i32_0 : i32, i32, i32
  }
  func.func @transform_1(%arg0: i32) -> (i32, i32, i32) {
    %c0_i32 = arith.constant 0 : i32
    %c0_i32_0 = arith.constant 0 : i32
    %c0_i32_1 = arith.constant 0 : i32
    return %c0_i32, %arg0, %c0_i32_0 : i32, i32, i32
  }
  func.func @transform_2(%arg0: i32) -> (i32, i32) {
    %c0_i32 = arith.constant 0 : i32
    %c0_i32_0 = arith.constant 0 : i32
    return %arg0, %c0_i32 : i32, i32
  }
  func.func @transform_3(%arg0: i32) -> (i32, i32) {
    %c0_i32 = arith.constant 0 : i32
    %c0_i32_0 = arith.constant 0 : i32
    return %arg0, %c0_i32 : i32, i32
  }
  func.func @transform_4(%arg0: i32) -> (i32, i32, i32) {
    %c0_i32 = arith.constant 0 : i32
    %c0_i32_0 = arith.constant 0 : i32
    %c0_i32_1 = arith.constant 0 : i32
    return %c0_i32, %arg0, %c0_i32_0 : i32, i32, i32
  }
}

</mosaic_0001>

<bundles_post_ra>
// kernel: tpu_custom_call.1
= control target key start
LH: loop header
LB: loop body
LE: loop exit
PB: predicated region body
PF: predicated region fallthrough
CT: control target
= control target key end

     0   :  { %9 = vsyncpa [#allocation3], 0  ;;  %s250_s0 = inlined_call_operand.vmem [shape: f32[2,4,16], index: 0, kind: input, shape index: {}]   ;;  %s251_s1 = inlined_call_operand.hbm [shape: f32[2,4,16], index: 1, kind: input, shape index: {}]   ;;  %s252_s2 = inlined_call_operand.vmem [shape: f32[4,1], index: 2, kind: input, shape index: {}]   ;;  %s253_s3 = inlined_call_operand.vmem [shape: f32[4,1], index: 3, kind: input, shape index: {}]   ;;  %s254_s4 = inlined_call_operand.hbm [shape: f32[2,4,16], index: 4, kind: output, shape index: {}]  }
   0x1   :  { %10 = vsyncpa [#allocation4], 0  ;;  %s17_s17 = sshll.u32 %s251_s1, 4  ;;  %s187_s18 = smov [#allocation2]   ;;  %s18_s17 = int_to_ptr.hbm [resolvable:$true] %s17_s17 }
   0x2   :  { %s19_s19 = sshll.u32 %s187_s18, 4  ;;  %s188_s20 = smov 64   ;;  %s20_s19 = int_to_ptr.vmem [resolvable:$true] %s19_s19 }
   0x3   :  { %s189_s21 = smov 4  }
   0x4   :  { %25 = dma.hbm_to_vmem [thread:$0]  %s18_s17, 128, %s20_s19, [#allocation3], %s188_s20, %s188_s20, %s189_s21  }
   0x5   :  { %183 = dma.done.wait [#allocation3], 128  }
   0x6   :  { %184 = vsyncadd [#allocation3], 4294967168  ;;  %vm36_vm0 = vcmask 125952   ;;  %v34_v0 = vld [vmem:[%s250_s0] sm:$0xf]  ;;  %v190_v12 = vmov 0  }
   0x7   :  { %v35_v1 = vld [vmem:[%s250_s0 + $0x4] sm:$0xf]  ;;  %v37_v2 = vsel %vm36_vm0, %v34_v0, 0.0  ;;  %v40_v4 = vmul.f32 %v34_v0, %v34_v0  ;;  %127 = vset.pattern.permute.xlu1 %v190_v12  ;;  %128 = vset.pattern.permute.xlu0 %v190_v12  ;;  %v67_v27 = vld [vmem:[%s252_s2] sm:$0xf]  ;;  %s191_s2 = smov [#allocation5]  }
   0x8   :  { %v38_v3 = vsel %vm36_vm0, %v35_v1, 0.0  ;;  %v41_v5 = vmul.f32 %v35_v1, %v35_v1  ;;  %v69_v31 = vld [vmem:[%s253_s3] sm:$0xf]  ;;  %v91_v42 = vld [vmem:[#allocation2 + $0x4] sm:$0xf]  ;;  %s106_s28 = sshll.u32 %s191_s2, 4  ;;  %s107_s28 = int_to_ptr.vmem [resolvable:$true] %s106_s28 }
   0x9   :  { %v39_v6 = vadd.f32 %v38_v3, %v37_v2  ;;  %v42_v7 = vsel %vm36_vm0, %v40_v4, 0.0  ;;  %v90_v41 = vld [vmem:[#allocation2] sm:$0xf]  ;;  %s108_s3 = sshll.u32 %s254_s4, 4  ;;  %v192_v45 = vmov -1.0   ;;  %s109_s3 = int_to_ptr.hbm [resolvable:$true] %s108_s3 }
   0xa   :  { %v43_v8 = vsel %vm36_vm0, %v41_v5, 0.0 }
   0xb   :  { %v45_v9 = vsel %vm36_vm0, %v39_v6, 0.0  ;;  %v44_v10 = vadd.f32 %v43_v8, %v42_v7 }
   0xc   :  { %46 = vadd.xlane.f32.xlu0 %v45_v9 }
   0xd   :  { %v49_v11 = vsel %vm36_vm0, %v44_v10, 0.0 }
  0x14   :  { %50 = vadd.xlane.f32.xlu0 %v49_v11 }
  0x7f   :  { %v47_v13 = vpop.xlane.xlu0 %46 }
  0x80   :  { %v48_v14 = vmul.f32 0.03125, %v47_v13 }
  0x82   :  { %v53_v16 = vmul.f32 %v48_v14, %v48_v14 }
  0x87   :  { %v51_v15 = vpop.xlane.xlu0 %50 }
  0x88   :  { %v52_v17 = vmul.f32 0.03125, %v51_v15 }
  0x8a   :  { %v54_v18 = vsub.f32 %v52_v17, %v53_v16 }
  0x8c   :  { %v55_v19 = vmax.f32 %v54_v18, 0.0 }
  0x8e   :  { %v56_v20 = vadd.f32 1e-05, %v55_v19 }
  0x90   :  { %129 = vrsqrt.f32 %v56_v20  ;;  %vm63_vm2 = vweird.f32 %v56_v20 }
  0x96   :  { %v130_v21 = vpop.eup %129 }
  0x97   :  { %v58_v22 = vmul.f32 %v130_v21, %v56_v20  ;;  %vm64_vm1 = vweird.f32 %v130_v21 }
  0x98   :  { %vm65_vm3 = vmor %vm63_vm2, %vm64_vm1 }
  0x99   :  { %v59_v23 = vmul.f32 %v130_v21, %v58_v22 }
  0x9b   :  { %v60_v24 = vmul.f32 0.5, %v59_v23 }
  0x9d   :  { %v61_v25 = vsub.f32 1.5, %v60_v24 }
  0x9f   :  { %v62_v26 = vmul.f32 %v130_v21, %v61_v25 }
  0xa1   :  { %v66_v28 = vsel %vm65_vm3, %v130_v21, %v62_v26 }
  0xa2   :  { %v68_v29 = vmul.f32 %v67_v27, %v66_v28 }
  0xa4   :  { %74 = vperm.xlu1 %127, %v68_v29   ;;  %v70_v30 = vmul.f32 %v68_v29, %v48_v14 }
  0xa6   :  { %v71_v32 = vsub.f32 %v69_v31, %v70_v30 }
  0xac   :  { %81 = vperm.xlu1 %127, %v71_v32  }
 0x116   :  { %v75_v33 = vpop.permute.xlu1 %74 }
 0x117   :  { %v77_v34 = vmul.f32 %v75_v33, %v34_v0  ;;  %v78_v35 = vmul.f32 %v75_v33, %v35_v1 }
 0x11e   :  { %v82_v36 = vpop.permute.xlu1 %81 }
 0x11f   :  { %v84_v37 = vadd.f32 %v82_v36, %v77_v34  ;;  %v85_v38 = vadd.f32 %v82_v36, %v78_v35 }
 0x121   :  { %v86_v39 = vmul.f32 4.0, %v84_v37  ;;  %v87_v40 = vmul.f32 4.0, %v85_v38  ;;  %vm96_vm6 = vcmp.eq.f32.partialorder %v84_v37, 0.0  ;;  %vm97_vm7 = vcmp.eq.f32.partialorder %v85_v38, 0.0 }
 0x123   :  { %131 = vtanh.f32 %v86_v39 }
 0x124   :  { %133 = vtanh.f32 %v87_v40 }
 0x129   :  { %v132_v43 = vpop.eup %131 }
 0x12a   :  { %v134_v44 = vpop.eup %133  ;;  %vm92_vm4 = vcmp.gt.f32.partialorder %v132_v43, %v90_v41 }
 0x12b   :  { %vm93_vm5 = vcmp.gt.f32.partialorder %v134_v44, %v91_v42  ;;  %v94_v46 = vsel %vm92_vm4, 1.0, %v192_v45 }
 0x12c   :  { %v95_v47 = vsel %vm93_vm5, 1.0, %v192_v45  ;;  %v98_v48 = vsel %vm96_vm6, 0.0, %v94_v46 }
 0x12d   :  { %v99_v49 = vsel %vm97_vm7, 0.0, %v95_v47  ;;  %100 = vst.msk [vmem:[#allocation5] sm:$0xf] %vm36_vm0, %v98_v48 }
 0x12e   :  { %101 = vst.msk [vmem:[#allocation5 + $0x4] sm:$0xf] %vm36_vm0, %v99_v49 }
 0x12f   :  { %114 = dma.vmem_to_hbm [thread:$0]  %s107_s28, 128, %s109_s3, [#allocation4], %s188_s20, %s188_s20, %s189_s21  }
 0x130   :  { %185 = dma.done.wait [#allocation4], 128  }
 0x131   :  { %186 = vsyncadd [#allocation4], 4294967168 }
 0x132   :  { %119 = vsyncpa [#allocation3], 1 }
 0x133   :  { %120 = vsyncpa [#allocation4], 1 }

</bundles_post_ra>
